<compile_context>
chip_gen: v5e
topology: v5e:2x2
jax: 0.10.0
libtpu: 0.0.40
codegen_flags: <defaults>
</compile_context>

<pallas_src>
import jax
import jax.numpy as jnp
from jax.experimental import pallas as pl
from jax.experimental.pallas import tpu as pltpu


def _make_prompt_kernel(tb: int, n_ctx: int, n_suf: int):
    def _prompt_kernel(tgt_ref, bias_ref, ctx_ref, prefix_hbm, suffix_hbm,
                       out_ref, sem):
        # tgt_ref:    (B_pad,) int32, SMEM (scalar prefetch)
        # bias_ref:   (tb, 1, D)        VMEM
        # ctx_ref:    (n_ctx, D)        VMEM (shared across steps)
        # prefix_hbm: (n_cls, 1, D)     HBM (pl.ANY)
        # suffix_hbm: (n_cls, n_suf, D) HBM (pl.ANY)
        # out_ref:    (tb, 1+n_ctx+n_suf, D) VMEM output block
        # sem:        (tb, 2) DMA semaphores
        b0 = pl.program_id(0) * tb

        # Issue all class-row gather DMAs (HBM -> output block rows) up front so
        # they run concurrently with the ctx+bias VPU work below.
        for r in range(tb):
            cls = tgt_ref[b0 + r]
            pltpu.make_async_copy(
                prefix_hbm.at[cls], out_ref.at[r, 0:1, :], sem.at[r, 0]).start()
            pltpu.make_async_copy(
                suffix_hbm.at[cls],
                out_ref.at[r, pl.ds(1 + n_ctx, n_suf), :],
                sem.at[r, 1]).start()

        # ctx_shifted = ctx[None] + bias[:, None]  -> middle n_ctx rows.
        out_ref[:, 1:1 + n_ctx, :] = (
            ctx_ref[...][None, :, :] + bias_ref[...]).astype(out_ref.dtype)

        # All gathers must land before the pipeline writes this block back.
        for r in range(tb):
            pltpu.make_async_copy(
                prefix_hbm.at[0], out_ref.at[r, 0:1, :], sem.at[r, 0]).wait()
            pltpu.make_async_copy(
                suffix_hbm.at[0],
                out_ref.at[r, pl.ds(1 + n_ctx, n_suf), :],
                sem.at[r, 1]).wait()

    return _prompt_kernel


def prompt_learner_hoi_forward(bias, target, ctx, token_prefix, token_suffix,
                               *, tb=None):
    """bias: (B, D) float; target: (B,) int class indices.

    Returns prompts of shape (B, 1 + n_ctx + n_suffix, D).
    """
    B, D = bias.shape
    n_ctx = ctx.shape[0]
    n_suf = token_suffix.shape[1]
    L = 1 + n_ctx + n_suf

    out_dtype = token_prefix.dtype
    assert token_suffix.dtype == out_dtype, "prefix/suffix dtypes must match"

    itemsize = jnp.dtype(out_dtype).itemsize
    if tb is None:
        # Largest batch tile whose output block stays within a per-block budget
        # that (double-buffered, plus bias/ctx) fits the v7x 32 MiB scoped-VMEM
        # default; capped at 64 rows so production B still yields >=2 grid steps.
        budget = 8 * 1024 * 1024
        tb = max(1, min(64, B, budget // max(1, L * D * itemsize)))
    tb = max(1, min(tb, B))

    n_steps = pl.cdiv(B, tb)
    B_pad = n_steps * tb
    if B_pad != B:
        bias = jnp.pad(bias, ((0, B_pad - B), (0, 0)))
        target = jnp.pad(target, (0, B_pad - B))   # pad ids -> class 0 (in range)

    bias3 = bias.reshape(B_pad, 1, D)
    target = target.astype(jnp.int32)

    grid_spec = pltpu.PrefetchScalarGridSpec(
        num_scalar_prefetch=1,          # `target` -> SMEM, read inside the kernel
        grid=(n_steps,),
        in_specs=[
            # per-batch bias rows, TB at a time
            pl.BlockSpec((tb, 1, D), lambda b, tgt: (b, 0, 0)),
            # shared ctx, same block every step
            pl.BlockSpec((n_ctx, D), lambda b, tgt: (0, 0)),
            # raw HBM refs for the data-dependent class gathers (manual DMA)
            pl.BlockSpec(memory_space=pl.ANY),
            pl.BlockSpec(memory_space=pl.ANY),
        ],
        out_specs=pl.BlockSpec((tb, L, D), lambda b, tgt: (b, 0, 0)),
        scratch_shapes=[pltpu.SemaphoreType.DMA((tb, 2))],
    )

    bytes_accessed = (
        bias3.size * bias3.dtype.itemsize
        + ctx.size * ctx.dtype.itemsize
        + B_pad * (1 + n_suf) * D * itemsize      # gathered class rows
        + B_pad * L * D * itemsize                # output writeback
    )
    cost = pl.CostEstimate(flops=B_pad * n_ctx * D, transcendentals=0,
                           bytes_accessed=bytes_accessed)

    out = pl.pallas_call(
        _make_prompt_kernel(tb, n_ctx, n_suf),
        out_shape=jax.ShapeDtypeStruct((B_pad, L, D), out_dtype),
        grid_spec=grid_spec,
        compiler_params=pltpu.CompilerParams(
            dimension_semantics=("parallel",)      # batch tiles are independent
        ),
        cost_estimate=cost,
    )(target, bias3, ctx, token_prefix, token_suffix)

    return out[:B] if B_pad != B else out


if __name__ == "__main__":
    # Small, module-consistent shapes (lane-dense D, L multiple of 8).
    n_cls = 6          # number of class names
    n_ctx = 5          # learnable context tokens (module hard-codes 5)
    ctx_dim = 128      # clip_model.ln_final.weight.shape[0] (small synthetic)
    seq_len = 16       # tokenized prompt length (77 in CLIP; small here)
    n_suf = seq_len - 1 - n_ctx
    B = 8              # batch of (bias, target) pairs
    dtype = jnp.float32

    key = jax.random.PRNGKey(0)
    k_ctx, k_pre, k_suf, k_bias, k_tgt = jax.random.split(key, 5)

    # nn.init.normal_(ctx_vectors, std=0.02)
    ctx = (0.02 * jax.random.normal(k_ctx, (n_ctx, ctx_dim))).astype(dtype)
    # token embeddings of prefix (SOS) and suffix (name + EOS + pad) tokens,
    # normally produced by clip_model.token_embedding; synthesized here.
    token_prefix = jax.random.normal(k_pre, (n_cls, 1, ctx_dim)).astype(dtype)
    token_suffix = jax.random.normal(k_suf, (n_cls, n_suf, ctx_dim)).astype(dtype)

    bias = jax.random.normal(k_bias, (B, ctx_dim)).astype(dtype)
    target = jax.random.randint(k_tgt, (B,), 0, n_cls, dtype=jnp.int32)

    out = prompt_learner_hoi_forward(bias, target, ctx, token_prefix,
                                     token_suffix, tb=4)   # 2 grid steps
    out = jax.block_until_ready(out)

    # Pure-JAX reference for correctness.
    ref_prefix = token_prefix[target]                      # (B, 1, D)
    ref_suffix = token_suffix[target]                      # (B, n_suf, D)
    ref_ctx_shifted = ctx[None, :, :] + bias[:, None, :]   # (B, n_ctx, D)
    ref = jnp.concatenate([ref_prefix, ref_ctx_shifted, ref_suffix], axis=1)

    assert out.shape == (B, seq_len, ctx_dim), out.shape
    assert jnp.allclose(out, ref, atol=1e-6, rtol=1e-6), "mismatch vs reference"
    print("KERNEL_OK")
</pallas_src>

<mosaic_0001>
module attributes {stable_mosaic.version = 11 : i64} {
  func.func @_prompt_kernel(%arg0: i32, %arg1: memref<8xi32, #tpu.memory_space<smem>>, %arg2: memref<4x1x128xf32, #tpu.memory_space<vmem>>, %arg3: memref<5x128xf32, #tpu.memory_space<vmem>>, %arg4: memref<6x1x128xf32, #tpu.memory_space<any>>, %arg5: memref<6x10x128xf32, #tpu.memory_space<any>>, %arg6: memref<4x16x128xf32, #tpu.memory_space<vmem>>, %arg7: memref<4x2x!tpu.dma_semaphore, #tpu.memory_space<semaphore_mem>>) attributes {dimension_semantics = [#tpu.dimension_semantics<parallel>], iteration_bounds = array<i64: 2>, scalar_prefetch = 1 : i64, scratch_operands = 1 : i64, tpu.core_type = #tpu.core_type<tc>, window_params = [{transform_indices = @transform_0, window_bounds = array<i64: 4, 1, 128>}, {pipeline_mode = #tpu.pipeline_mode<synchronous>, transform_indices = @transform_1, window_bounds = array<i64: 5, 128>}, {}, {}, {transform_indices = @transform_4, window_bounds = array<i64: 4, 16, 128>}]} {
    %c4_i32 = arith.constant 4 : i32
    %0 = arith.muli %arg0, %c4_i32 : i32
    %c0_i32 = arith.constant 0 : i32
    %1 = arith.addi %0, %c0_i32 : i32
    %2 = arith.index_cast %1 : i32 to index
    %3 = memref.load %arg1[%2] : memref<8xi32, #tpu.memory_space<smem>>
    %c0_i32_0 = arith.constant 0 : i32
    %c0_i32_1 = arith.constant 0 : i32
    %c0_i32_2 = arith.constant 0 : i32
    %c0_i32_3 = arith.constant 0 : i32
    %c0_i32_4 = arith.constant 0 : i32
    %4 = tpu.memref_slice %arg4[%3, %c0_i32_3, %c0_i32_4] : memref<6x1x128xf32, #tpu.memory_space<any>> -> memref<1x1x128xf32, #tpu.memory_space<any>>
    %5 = tpu.memref_squeeze %4 : memref<1x1x128xf32, #tpu.memory_space<any>> -> memref<1x128xf32, #tpu.memory_space<any>>
    %c0_i32_5 = arith.constant 0 : i32
    %c0_i32_6 = arith.constant 0 : i32
    %6 = tpu.memref_slice %arg6[%c0_i32_0, %c0_i32_5, %c0_i32_6] : memref<4x16x128xf32, #tpu.memory_space<vmem>> -> memref<1x1x128xf32, #tpu.memory_space<vmem>>
    %7 = tpu.memref_squeeze %6 : memref<1x1x128xf32, #tpu.memory_space<vmem>> -> memref<1x128xf32, #tpu.memory_space<vmem>>
    %8 = tpu.memref_slice %arg7[%c0_i32_1, %c0_i32_2] : memref<4x2x!tpu.dma_semaphore, #tpu.memory_space<semaphore_mem>> -> memref<1x1x!tpu.dma_semaphore, #tpu.memory_space<semaphore_mem>>
    %9 = tpu.memref_squeeze %8 : memref<1x1x!tpu.dma_semaphore, #tpu.memory_space<semaphore_mem>> -> memref<!tpu.dma_semaphore, #tpu.memory_space<semaphore_mem>>
    tpu.enqueue_dma source(%5 : memref<1x128xf32, #tpu.memory_space<any>>) target(%7 : memref<1x128xf32, #tpu.memory_space<vmem>>) target_semaphore(%9 : memref<!tpu.dma_semaphore, #tpu.memory_space<semaphore_mem>>)
    %c0_i32_7 = arith.constant 0 : i32
    %c0_i32_8 = arith.constant 0 : i32
    %c1_i32 = arith.constant 1 : i32
    %c0_i32_9 = arith.constant 0 : i32
    %c0_i32_10 = arith.constant 0 : i32
    %10 = tpu.memref_slice %arg5[%3, %c0_i32_9, %c0_i32_10] : memref<6x10x128xf32, #tpu.memory_space<any>> -> memref<1x10x128xf32, #tpu.memory_space<any>>
    %11 = tpu.memref_squeeze %10 : memref<1x10x128xf32, #tpu.memory_space<any>> -> memref<10x128xf32, #tpu.memory_space<any>>
    %c6_i32 = arith.constant 6 : i32
    %c0_i32_11 = arith.constant 0 : i32
    %12 = tpu.memref_slice %arg6[%c0_i32_7, %c6_i32, %c0_i32_11] : memref<4x16x128xf32, #tpu.memory_space<vmem>> -> memref<1x10x128xf32, #tpu.memory_space<vmem>>
    %13 = tpu.memref_squeeze %12 : memref<1x10x128xf32, #tpu.memory_space<vmem>> -> memref<10x128xf32, #tpu.memory_space<vmem>>
    %14 = tpu.memref_slice %arg7[%c0_i32_8, %c1_i32] : memref<4x2x!tpu.dma_semaphore, #tpu.memory_space<semaphore_mem>> -> memref<1x1x!tpu.dma_semaphore, #tpu.memory_space<semaphore_mem>>
    %15 = tpu.memref_squeeze %14 : memref<1x1x!tpu.dma_semaphore, #tpu.memory_space<semaphore_mem>> -> memref<!tpu.dma_semaphore, #tpu.memory_space<semaphore_mem>>
    tpu.enqueue_dma source(%11 : memref<10x128xf32, #tpu.memory_space<any>>) target(%13 : memref<10x128xf32, #tpu.memory_space<vmem>>) target_semaphore(%15 : memref<!tpu.dma_semaphore, #tpu.memory_space<semaphore_mem>>)
    %c1_i32_12 = arith.constant 1 : i32
    %16 = arith.addi %0, %c1_i32_12 : i32
    %17 = arith.index_cast %16 : i32 to index
    %18 = memref.load %arg1[%17] : memref<8xi32, #tpu.memory_space<smem>>
    %c1_i32_13 = arith.constant 1 : i32
    %c1_i32_14 = arith.constant 1 : i32
    %c0_i32_15 = arith.constant 0 : i32
    %c0_i32_16 = arith.constant 0 : i32
    %c0_i32_17 = arith.constant 0 : i32
    %19 = tpu.memref_slice %arg4[%18, %c0_i32_16, %c0_i32_17] : memref<6x1x128xf32, #tpu.memory_space<any>> -> memref<1x1x128xf32, #tpu.memory_space<any>>
    %20 = tpu.memref_squeeze %19 : memref<1x1x128xf32, #tpu.memory_space<any>> -> memref<1x128xf32, #tpu.memory_space<any>>
    %c0_i32_18 = arith.constant 0 : i32
    %c0_i32_19 = arith.constant 0 : i32
    %21 = tpu.memref_slice %arg6[%c1_i32_13, %c0_i32_18, %c0_i32_19] : memref<4x16x128xf32, #tpu.memory_space<vmem>> -> memref<1x1x128xf32, #tpu.memory_space<vmem>>
    %22 = tpu.memref_squeeze %21 : memref<1x1x128xf32, #tpu.memory_space<vmem>> -> memref<1x128xf32, #tpu.memory_space<vmem>>
    %23 = tpu.memref_slice %arg7[%c1_i32_14, %c0_i32_15] : memref<4x2x!tpu.dma_semaphore, #tpu.memory_space<semaphore_mem>> -> memref<1x1x!tpu.dma_semaphore, #tpu.memory_space<semaphore_mem>>
    %24 = tpu.memref_squeeze %23 : memref<1x1x!tpu.dma_semaphore, #tpu.memory_space<semaphore_mem>> -> memref<!tpu.dma_semaphore, #tpu.memory_space<semaphore_mem>>
    tpu.enqueue_dma source(%20 : memref<1x128xf32, #tpu.memory_space<any>>) target(%22 : memref<1x128xf32, #tpu.memory_space<vmem>>) target_semaphore(%24 : memref<!tpu.dma_semaphore, #tpu.memory_space<semaphore_mem>>)
    %c1_i32_20 = arith.constant 1 : i32
    %c1_i32_21 = arith.constant 1 : i32
    %c1_i32_22 = arith.constant 1 : i32
    %c0_i32_23 = arith.constant 0 : i32
    %c0_i32_24 = arith.constant 0 : i32
    %25 = tpu.memref_slice %arg5[%18, %c0_i32_23, %c0_i32_24] : memref<6x10x128xf32, #tpu.memory_space<any>> -> memref<1x10x128xf32, #tpu.memory_space<any>>
    %26 = tpu.memref_squeeze %25 : memref<1x10x128xf32, #tpu.memory_space<any>> -> memref<10x128xf32, #tpu.memory_space<any>>
    %c6_i32_25 = arith.constant 6 : i32
    %c0_i32_26 = arith.constant 0 : i32
    %27 = tpu.memref_slice %arg6[%c1_i32_20, %c6_i32_25, %c0_i32_26] : memref<4x16x128xf32, #tpu.memory_space<vmem>> -> memref<1x10x128xf32, #tpu.memory_space<vmem>>
    %28 = tpu.memref_squeeze %27 : memref<1x10x128xf32, #tpu.memory_space<vmem>> -> memref<10x128xf32, #tpu.memory_space<vmem>>
    %29 = tpu.memref_slice %arg7[%c1_i32_21, %c1_i32_22] : memref<4x2x!tpu.dma_semaphore, #tpu.memory_space<semaphore_mem>> -> memref<1x1x!tpu.dma_semaphore, #tpu.memory_space<semaphore_mem>>
    %30 = tpu.memref_squeeze %29 : memref<1x1x!tpu.dma_semaphore, #tpu.memory_space<semaphore_mem>> -> memref<!tpu.dma_semaphore, #tpu.memory_space<semaphore_mem>>
    tpu.enqueue_dma source(%26 : memref<10x128xf32, #tpu.memory_space<any>>) target(%28 : memref<10x128xf32, #tpu.memory_space<vmem>>) target_semaphore(%30 : memref<!tpu.dma_semaphore, #tpu.memory_space<semaphore_mem>>)
    %c2_i32 = arith.constant 2 : i32
    %31 = arith.addi %0, %c2_i32 : i32
    %32 = arith.index_cast %31 : i32 to index
    %33 = memref.load %arg1[%32] : memref<8xi32, #tpu.memory_space<smem>>
    %c2_i32_27 = arith.constant 2 : i32
    %c2_i32_28 = arith.constant 2 : i32
    %c0_i32_29 = arith.constant 0 : i32
    %c0_i32_30 = arith.constant 0 : i32
    %c0_i32_31 = arith.constant 0 : i32
    %34 = tpu.memref_slice %arg4[%33, %c0_i32_30, %c0_i32_31] : memref<6x1x128xf32, #tpu.memory_space<any>> -> memref<1x1x128xf32, #tpu.memory_space<any>>
    %35 = tpu.memref_squeeze %34 : memref<1x1x128xf32, #tpu.memory_space<any>> -> memref<1x128xf32, #tpu.memory_space<any>>
    %c0_i32_32 = arith.constant 0 : i32
    %c0_i32_33 = arith.constant 0 : i32
    %36 = tpu.memref_slice %arg6[%c2_i32_27, %c0_i32_32, %c0_i32_33] : memref<4x16x128xf32, #tpu.memory_space<vmem>> -> memref<1x1x128xf32, #tpu.memory_space<vmem>>
    %37 = tpu.memref_squeeze %36 : memref<1x1x128xf32, #tpu.memory_space<vmem>> -> memref<1x128xf32, #tpu.memory_space<vmem>>
    %38 = tpu.memref_slice %arg7[%c2_i32_28, %c0_i32_29] : memref<4x2x!tpu.dma_semaphore, #tpu.memory_space<semaphore_mem>> -> memref<1x1x!tpu.dma_semaphore, #tpu.memory_space<semaphore_mem>>
    %39 = tpu.memref_squeeze %38 : memref<1x1x!tpu.dma_semaphore, #tpu.memory_space<semaphore_mem>> -> memref<!tpu.dma_semaphore, #tpu.memory_space<semaphore_mem>>
    tpu.enqueue_dma source(%35 : memref<1x128xf32, #tpu.memory_space<any>>) target(%37 : memref<1x128xf32, #tpu.memory_space<vmem>>) target_semaphore(%39 : memref<!tpu.dma_semaphore, #tpu.memory_space<semaphore_mem>>)
    %c2_i32_34 = arith.constant 2 : i32
    %c2_i32_35 = arith.constant 2 : i32
    %c1_i32_36 = arith.constant 1 : i32
    %c0_i32_37 = arith.constant 0 : i32
    %c0_i32_38 = arith.constant 0 : i32
    %40 = tpu.memref_slice %arg5[%33, %c0_i32_37, %c0_i32_38] : memref<6x10x128xf32, #tpu.memory_space<any>> -> memref<1x10x128xf32, #tpu.memory_space<any>>
    %41 = tpu.memref_squeeze %40 : memref<1x10x128xf32, #tpu.memory_space<any>> -> memref<10x128xf32, #tpu.memory_space<any>>
    %c6_i32_39 = arith.constant 6 : i32
    %c0_i32_40 = arith.constant 0 : i32
    %42 = tpu.memref_slice %arg6[%c2_i32_34, %c6_i32_39, %c0_i32_40] : memref<4x16x128xf32, #tpu.memory_space<vmem>> -> memref<1x10x128xf32, #tpu.memory_space<vmem>>
    %43 = tpu.memref_squeeze %42 : memref<1x10x128xf32, #tpu.memory_space<vmem>> -> memref<10x128xf32, #tpu.memory_space<vmem>>
    %44 = tpu.memref_slice %arg7[%c2_i32_35, %c1_i32_36] : memref<4x2x!tpu.dma_semaphore, #tpu.memory_space<semaphore_mem>> -> memref<1x1x!tpu.dma_semaphore, #tpu.memory_space<semaphore_mem>>
    %45 = tpu.memref_squeeze %44 : memref<1x1x!tpu.dma_semaphore, #tpu.memory_space<semaphore_mem>> -> memref<!tpu.dma_semaphore, #tpu.memory_space<semaphore_mem>>
    tpu.enqueue_dma source(%41 : memref<10x128xf32, #tpu.memory_space<any>>) target(%43 : memref<10x128xf32, #tpu.memory_space<vmem>>) target_semaphore(%45 : memref<!tpu.dma_semaphore, #tpu.memory_space<semaphore_mem>>)
    %c3_i32 = arith.constant 3 : i32
    %46 = arith.addi %0, %c3_i32 : i32
    %47 = arith.index_cast %46 : i32 to index
    %48 = memref.load %arg1[%47] : memref<8xi32, #tpu.memory_space<smem>>
    %c3_i32_41 = arith.constant 3 : i32
    %c3_i32_42 = arith.constant 3 : i32
    %c0_i32_43 = arith.constant 0 : i32
    %c0_i32_44 = arith.constant 0 : i32
    %c0_i32_45 = arith.constant 0 : i32
    %49 = tpu.memref_slice %arg4[%48, %c0_i32_44, %c0_i32_45] : memref<6x1x128xf32, #tpu.memory_space<any>> -> memref<1x1x128xf32, #tpu.memory_space<any>>
    %50 = tpu.memref_squeeze %49 : memref<1x1x128xf32, #tpu.memory_space<any>> -> memref<1x128xf32, #tpu.memory_space<any>>
    %c0_i32_46 = arith.constant 0 : i32
    %c0_i32_47 = arith.constant 0 : i32
    %51 = tpu.memref_slice %arg6[%c3_i32_41, %c0_i32_46, %c0_i32_47] : memref<4x16x128xf32, #tpu.memory_space<vmem>> -> memref<1x1x128xf32, #tpu.memory_space<vmem>>
    %52 = tpu.memref_squeeze %51 : memref<1x1x128xf32, #tpu.memory_space<vmem>> -> memref<1x128xf32, #tpu.memory_space<vmem>>
    %53 = tpu.memref_slice %arg7[%c3_i32_42, %c0_i32_43] : memref<4x2x!tpu.dma_semaphore, #tpu.memory_space<semaphore_mem>> -> memref<1x1x!tpu.dma_semaphore, #tpu.memory_space<semaphore_mem>>
    %54 = tpu.memref_squeeze %53 : memref<1x1x!tpu.dma_semaphore, #tpu.memory_space<semaphore_mem>> -> memref<!tpu.dma_semaphore, #tpu.memory_space<semaphore_mem>>
    tpu.enqueue_dma source(%50 : memref<1x128xf32, #tpu.memory_space<any>>) target(%52 : memref<1x128xf32, #tpu.memory_space<vmem>>) target_semaphore(%54 : memref<!tpu.dma_semaphore, #tpu.memory_space<semaphore_mem>>)
    %c3_i32_48 = arith.constant 3 : i32
    %c3_i32_49 = arith.constant 3 : i32
    %c1_i32_50 = arith.constant 1 : i32
    %c0_i32_51 = arith.constant 0 : i32
    %c0_i32_52 = arith.constant 0 : i32
    %55 = tpu.memref_slice %arg5[%48, %c0_i32_51, %c0_i32_52] : memref<6x10x128xf32, #tpu.memory_space<any>> -> memref<1x10x128xf32, #tpu.memory_space<any>>
    %56 = tpu.memref_squeeze %55 : memref<1x10x128xf32, #tpu.memory_space<any>> -> memref<10x128xf32, #tpu.memory_space<any>>
    %c6_i32_53 = arith.constant 6 : i32
    %c0_i32_54 = arith.constant 0 : i32
    %57 = tpu.memref_slice %arg6[%c3_i32_48, %c6_i32_53, %c0_i32_54] : memref<4x16x128xf32, #tpu.memory_space<vmem>> -> memref<1x10x128xf32, #tpu.memory_space<vmem>>
    %58 = tpu.memref_squeeze %57 : memref<1x10x128xf32, #tpu.memory_space<vmem>> -> memref<10x128xf32, #tpu.memory_space<vmem>>
    %59 = tpu.memref_slice %arg7[%c3_i32_49, %c1_i32_50] : memref<4x2x!tpu.dma_semaphore, #tpu.memory_space<semaphore_mem>> -> memref<1x1x!tpu.dma_semaphore, #tpu.memory_space<semaphore_mem>>
    %60 = tpu.memref_squeeze %59 : memref<1x1x!tpu.dma_semaphore, #tpu.memory_space<semaphore_mem>> -> memref<!tpu.dma_semaphore, #tpu.memory_space<semaphore_mem>>
    tpu.enqueue_dma source(%56 : memref<10x128xf32, #tpu.memory_space<any>>) target(%58 : memref<10x128xf32, #tpu.memory_space<vmem>>) target_semaphore(%60 : memref<!tpu.dma_semaphore, #tpu.memory_space<semaphore_mem>>)
    %c0 = arith.constant 0 : index
    %c0_55 = arith.constant 0 : index
    %61 = vector.load %arg3[%c0, %c0_55] : memref<5x128xf32, #tpu.memory_space<vmem>>, vector<5x128xf32>
    %62 = vector.shape_cast %61 : vector<5x128xf32> to vector<1x5x128xf32>
    %c0_56 = arith.constant 0 : index
    %c0_57 = arith.constant 0 : index
    %c0_58 = arith.constant 0 : index
    %63 = vector.load %arg2[%c0_56, %c0_57, %c0_58] : memref<4x1x128xf32, #tpu.memory_space<vmem>>, vector<4x1x128xf32>
    %64 = vector.broadcast %62 : vector<1x5x128xf32> to vector<4x5x128xf32>
    %65 = vector.broadcast %63 : vector<4x1x128xf32> to vector<4x5x128xf32>
    %66 = arith.addf %64, %65 : vector<4x5x128xf32>
    %c0_59 = arith.constant 0 : index
    %c1 = arith.constant 1 : index
    %c0_60 = arith.constant 0 : index
    %67 = vector.load %arg6[%c0_59, %c1, %c0_60] : memref<4x16x128xf32, #tpu.memory_space<vmem>>, vector<4x5x128xf32>
    tpu.vector_store %arg6[%c0_59, %c1, %c0_60], %66 {strides = array<i32>} : memref<4x16x128xf32, #tpu.memory_space<vmem>>, vector<4x5x128xf32>,
    %c0_i32_61 = arith.constant 0 : i32
    %c0_i32_62 = arith.constant 0 : i32
    %c0_i32_63 = arith.constant 0 : i32
    %c0_i32_64 = arith.constant 0 : i32
    %c0_i32_65 = arith.constant 0 : i32
    %c0_i32_66 = arith.constant 0 : i32
    %68 = tpu.memref_slice %arg4[%c0_i32_61, %c0_i32_65, %c0_i32_66] : memref<6x1x128xf32, #tpu.memory_space<any>> -> memref<1x1x128xf32, #tpu.memory_space<any>>
    %69 = tpu.memref_squeeze %68 : memref<1x1x128xf32, #tpu.memory_space<any>> -> memref<1x128xf32, #tpu.memory_space<any>>
    %c0_i32_67 = arith.constant 0 : i32
    %c0_i32_68 = arith.constant 0 : i32
    %70 = tpu.memref_slice %arg6[%c0_i32_62, %c0_i32_67, %c0_i32_68] : memref<4x16x128xf32, #tpu.memory_space<vmem>> -> memref<1x1x128xf32, #tpu.memory_space<vmem>>
    %71 = tpu.memref_squeeze %70 : memref<1x1x128xf32, #tpu.memory_space<vmem>> -> memref<1x128xf32, #tpu.memory_space<vmem>>
    %72 = tpu.memref_slice %arg7[%c0_i32_63, %c0_i32_64] : memref<4x2x!tpu.dma_semaphore, #tpu.memory_space<semaphore_mem>> -> memref<1x1x!tpu.dma_semaphore, #tpu.memory_space<semaphore_mem>>
    %73 = tpu.memref_squeeze %72 : memref<1x1x!tpu.dma_semaphore, #tpu.memory_space<semaphore_mem>> -> memref<!tpu.dma_semaphore, #tpu.memory_space<semaphore_mem>>
    tpu.wait_dma2 semaphore(%73 : memref<!tpu.dma_semaphore, #tpu.memory_space<semaphore_mem>>) src(%69 : memref<1x128xf32, #tpu.memory_space<any>>) dst(%71 : memref<1x128xf32, #tpu.memory_space<vmem>>)
    %c0_i32_69 = arith.constant 0 : i32
    %c0_i32_70 = arith.constant 0 : i32
    %c0_i32_71 = arith.constant 0 : i32
    %c1_i32_72 = arith.constant 1 : i32
    %c0_i32_73 = arith.constant 0 : i32
    %c0_i32_74 = arith.constant 0 : i32
    %74 = tpu.memref_slice %arg5[%c0_i32_69, %c0_i32_73, %c0_i32_74] : memref<6x10x128xf32, #tpu.memory_space<any>> -> memref<1x10x128xf32, #tpu.memory_space<any>>
    %75 = tpu.memref_squeeze %74 : memref<1x10x128xf32, #tpu.memory_space<any>> -> memref<10x128xf32, #tpu.memory_space<any>>
    %c6_i32_75 = arith.constant 6 : i32
    %c0_i32_76 = arith.constant 0 : i32
    %76 = tpu.memref_slice %arg6[%c0_i32_70, %c6_i32_75, %c0_i32_76] : memref<4x16x128xf32, #tpu.memory_space<vmem>> -> memref<1x10x128xf32, #tpu.memory_space<vmem>>
    %77 = tpu.memref_squeeze %76 : memref<1x10x128xf32, #tpu.memory_space<vmem>> -> memref<10x128xf32, #tpu.memory_space<vmem>>
    %78 = tpu.memref_slice %arg7[%c0_i32_71, %c1_i32_72] : memref<4x2x!tpu.dma_semaphore, #tpu.memory_space<semaphore_mem>> -> memref<1x1x!tpu.dma_semaphore, #tpu.memory_space<semaphore_mem>>
    %79 = tpu.memref_squeeze %78 : memref<1x1x!tpu.dma_semaphore, #tpu.memory_space<semaphore_mem>> -> memref<!tpu.dma_semaphore, #tpu.memory_space<semaphore_mem>>
    tpu.wait_dma2 semaphore(%79 : memref<!tpu.dma_semaphore, #tpu.memory_space<semaphore_mem>>) src(%75 : memref<10x128xf32, #tpu.memory_space<any>>) dst(%77 : memref<10x128xf32, #tpu.memory_space<vmem>>)
    %c0_i32_77 = arith.constant 0 : i32
    %c1_i32_78 = arith.constant 1 : i32
    %c1_i32_79 = arith.constant 1 : i32
    %c0_i32_80 = arith.constant 0 : i32
    %c0_i32_81 = arith.constant 0 : i32
    %c0_i32_82 = arith.constant 0 : i32
    %80 = tpu.memref_slice %arg4[%c0_i32_77, %c0_i32_81, %c0_i32_82] : memref<6x1x128xf32, #tpu.memory_space<any>> -> memref<1x1x128xf32, #tpu.memory_space<any>>
    %81 = tpu.memref_squeeze %80 : memref<1x1x128xf32, #tpu.memory_space<any>> -> memref<1x128xf32, #tpu.memory_space<any>>
    %c0_i32_83 = arith.constant 0 : i32
    %c0_i32_84 = arith.constant 0 : i32
    %82 = tpu.memref_slice %arg6[%c1_i32_78, %c0_i32_83, %c0_i32_84] : memref<4x16x128xf32, #tpu.memory_space<vmem>> -> memref<1x1x128xf32, #tpu.memory_space<vmem>>
    %83 = tpu.memref_squeeze %82 : memref<1x1x128xf32, #tpu.memory_space<vmem>> -> memref<1x128xf32, #tpu.memory_space<vmem>>
    %84 = tpu.memref_slice %arg7[%c1_i32_79, %c0_i32_80] : memref<4x2x!tpu.dma_semaphore, #tpu.memory_space<semaphore_mem>> -> memref<1x1x!tpu.dma_semaphore, #tpu.memory_space<semaphore_mem>>
    %85 = tpu.memref_squeeze %84 : memref<1x1x!tpu.dma_semaphore, #tpu.memory_space<semaphore_mem>> -> memref<!tpu.dma_semaphore, #tpu.memory_space<semaphore_mem>>
    tpu.wait_dma2 semaphore(%85 : memref<!tpu.dma_semaphore, #tpu.memory_space<semaphore_mem>>) src(%81 : memref<1x128xf32, #tpu.memory_space<any>>) dst(%83 : memref<1x128xf32, #tpu.memory_space<vmem>>)
    %c0_i32_85 = arith.constant 0 : i32
    %c1_i32_86 = arith.constant 1 : i32
    %c1_i32_87 = arith.constant 1 : i32
    %c1_i32_88 = arith.constant 1 : i32
    %c0_i32_89 = arith.constant 0 : i32
    %c0_i32_90 = arith.constant 0 : i32
    %86 = tpu.memref_slice %arg5[%c0_i32_85, %c0_i32_89, %c0_i32_90] : memref<6x10x128xf32, #tpu.memory_space<any>> -> memref<1x10x128xf32, #tpu.memory_space<any>>
    %87 = tpu.memref_squeeze %86 : memref<1x10x128xf32, #tpu.memory_space<any>> -> memref<10x128xf32, #tpu.memory_space<any>>
    %c6_i32_91 = arith.constant 6 : i32
    %c0_i32_92 = arith.constant 0 : i32
    %88 = tpu.memref_slice %arg6[%c1_i32_86, %c6_i32_91, %c0_i32_92] : memref<4x16x128xf32, #tpu.memory_space<vmem>> -> memref<1x10x128xf32, #tpu.memory_space<vmem>>
    %89 = tpu.memref_squeeze %88 : memref<1x10x128xf32, #tpu.memory_space<vmem>> -> memref<10x128xf32, #tpu.memory_space<vmem>>
    %90 = tpu.memref_slice %arg7[%c1_i32_87, %c1_i32_88] : memref<4x2x!tpu.dma_semaphore, #tpu.memory_space<semaphore_mem>> -> memref<1x1x!tpu.dma_semaphore, #tpu.memory_space<semaphore_mem>>
    %91 = tpu.memref_squeeze %90 : memref<1x1x!tpu.dma_semaphore, #tpu.memory_space<semaphore_mem>> -> memref<!tpu.dma_semaphore, #tpu.memory_space<semaphore_mem>>
    tpu.wait_dma2 semaphore(%91 : memref<!tpu.dma_semaphore, #tpu.memory_space<semaphore_mem>>) src(%87 : memref<10x128xf32, #tpu.memory_space<any>>) dst(%89 : memref<10x128xf32, #tpu.memory_space<vmem>>)
    %c0_i32_93 = arith.constant 0 : i32
    %c2_i32_94 = arith.constant 2 : i32
    %c2_i32_95 = arith.constant 2 : i32
    %c0_i32_96 = arith.constant 0 : i32
    %c0_i32_97 = arith.constant 0 : i32
    %c0_i32_98 = arith.constant 0 : i32
    %92 = tpu.memref_slice %arg4[%c0_i32_93, %c0_i32_97, %c0_i32_98] : memref<6x1x128xf32, #tpu.memory_space<any>> -> memref<1x1x128xf32, #tpu.memory_space<any>>
    %93 = tpu.memref_squeeze %92 : memref<1x1x128xf32, #tpu.memory_space<any>> -> memref<1x128xf32, #tpu.memory_space<any>>
    %c0_i32_99 = arith.constant 0 : i32
    %c0_i32_100 = arith.constant 0 : i32
    %94 = tpu.memref_slice %arg6[%c2_i32_94, %c0_i32_99, %c0_i32_100] : memref<4x16x128xf32, #tpu.memory_space<vmem>> -> memref<1x1x128xf32, #tpu.memory_space<vmem>>
    %95 = tpu.memref_squeeze %94 : memref<1x1x128xf32, #tpu.memory_space<vmem>> -> memref<1x128xf32, #tpu.memory_space<vmem>>
    %96 = tpu.memref_slice %arg7[%c2_i32_95, %c0_i32_96] : memref<4x2x!tpu.dma_semaphore, #tpu.memory_space<semaphore_mem>> -> memref<1x1x!tpu.dma_semaphore, #tpu.memory_space<semaphore_mem>>
    %97 = tpu.memref_squeeze %96 : memref<1x1x!tpu.dma_semaphore, #tpu.memory_space<semaphore_mem>> -> memref<!tpu.dma_semaphore, #tpu.memory_space<semaphore_mem>>
    tpu.wait_dma2 semaphore(%97 : memref<!tpu.dma_semaphore, #tpu.memory_space<semaphore_mem>>) src(%93 : memref<1x128xf32, #tpu.memory_space<any>>) dst(%95 : memref<1x128xf32, #tpu.memory_space<vmem>>)
    %c0_i32_101 = arith.constant 0 : i32
    %c2_i32_102 = arith.constant 2 : i32
    %c2_i32_103 = arith.constant 2 : i32
    %c1_i32_104 = arith.constant 1 : i32
    %c0_i32_105 = arith.constant 0 : i32
    %c0_i32_106 = arith.constant 0 : i32
    %98 = tpu.memref_slice %arg5[%c0_i32_101, %c0_i32_105, %c0_i32_106] : memref<6x10x128xf32, #tpu.memory_space<any>> -> memref<1x10x128xf32, #tpu.memory_space<any>>
    %99 = tpu.memref_squeeze %98 : memref<1x10x128xf32, #tpu.memory_space<any>> -> memref<10x128xf32, #tpu.memory_space<any>>
    %c6_i32_107 = arith.constant 6 : i32
    %c0_i32_108 = arith.constant 0 : i32
    %100 = tpu.memref_slice %arg6[%c2_i32_102, %c6_i32_107, %c0_i32_108] : memref<4x16x128xf32, #tpu.memory_space<vmem>> -> memref<1x10x128xf32, #tpu.memory_space<vmem>>
    %101 = tpu.memref_squeeze %100 : memref<1x10x128xf32, #tpu.memory_space<vmem>> -> memref<10x128xf32, #tpu.memory_space<vmem>>
    %102 = tpu.memref_slice %arg7[%c2_i32_103, %c1_i32_104] : memref<4x2x!tpu.dma_semaphore, #tpu.memory_space<semaphore_mem>> -> memref<1x1x!tpu.dma_semaphore, #tpu.memory_space<semaphore_mem>>
    %103 = tpu.memref_squeeze %102 : memref<1x1x!tpu.dma_semaphore, #tpu.memory_space<semaphore_mem>> -> memref<!tpu.dma_semaphore, #tpu.memory_space<semaphore_mem>>
    tpu.wait_dma2 semaphore(%103 : memref<!tpu.dma_semaphore, #tpu.memory_space<semaphore_mem>>) src(%99 : memref<10x128xf32, #tpu.memory_space<any>>) dst(%101 : memref<10x128xf32, #tpu.memory_space<vmem>>)
    %c0_i32_109 = arith.constant 0 : i32
    %c3_i32_110 = arith.constant 3 : i32
    %c3_i32_111 = arith.constant 3 : i32
    %c0_i32_112 = arith.constant 0 : i32
    %c0_i32_113 = arith.constant 0 : i32
    %c0_i32_114 = arith.constant 0 : i32
    %104 = tpu.memref_slice %arg4[%c0_i32_109, %c0_i32_113, %c0_i32_114] : memref<6x1x128xf32, #tpu.memory_space<any>> -> memref<1x1x128xf32, #tpu.memory_space<any>>
    %105 = tpu.memref_squeeze %104 : memref<1x1x128xf32, #tpu.memory_space<any>> -> memref<1x128xf32, #tpu.memory_space<any>>
    %c0_i32_115 = arith.constant 0 : i32
    %c0_i32_116 = arith.constant 0 : i32
    %106 = tpu.memref_slice %arg6[%c3_i32_110, %c0_i32_115, %c0_i32_116] : memref<4x16x128xf32, #tpu.memory_space<vmem>> -> memref<1x1x128xf32, #tpu.memory_space<vmem>>
    %107 = tpu.memref_squeeze %106 : memref<1x1x128xf32, #tpu.memory_space<vmem>> -> memref<1x128xf32, #tpu.memory_space<vmem>>
    %108 = tpu.memref_slice %arg7[%c3_i32_111, %c0_i32_112] : memref<4x2x!tpu.dma_semaphore, #tpu.memory_space<semaphore_mem>> -> memref<1x1x!tpu.dma_semaphore, #tpu.memory_space<semaphore_mem>>
    %109 = tpu.memref_squeeze %108 : memref<1x1x!tpu.dma_semaphore, #tpu.memory_space<semaphore_mem>> -> memref<!tpu.dma_semaphore, #tpu.memory_space<semaphore_mem>>
    tpu.wait_dma2 semaphore(%109 : memref<!tpu.dma_semaphore, #tpu.memory_space<semaphore_mem>>) src(%105 : memref<1x128xf32, #tpu.memory_space<any>>) dst(%107 : memref<1x128xf32, #tpu.memory_space<vmem>>)
    %c0_i32_117 = arith.constant 0 : i32
    %c3_i32_118 = arith.constant 3 : i32
    %c3_i32_119 = arith.constant 3 : i32
    %c1_i32_120 = arith.constant 1 : i32
    %c0_i32_121 = arith.constant 0 : i32
    %c0_i32_122 = arith.constant 0 : i32
    %110 = tpu.memref_slice %arg5[%c0_i32_117, %c0_i32_121, %c0_i32_122] : memref<6x10x128xf32, #tpu.memory_space<any>> -> memref<1x10x128xf32, #tpu.memory_space<any>>
    %111 = tpu.memref_squeeze %110 : memref<1x10x128xf32, #tpu.memory_space<any>> -> memref<10x128xf32, #tpu.memory_space<any>>
    %c6_i32_123 = arith.constant 6 : i32
    %c0_i32_124 = arith.constant 0 : i32
    %112 = tpu.memref_slice %arg6[%c3_i32_118, %c6_i32_123, %c0_i32_124] : memref<4x16x128xf32, #tpu.memory_space<vmem>> -> memref<1x10x128xf32, #tpu.memory_space<vmem>>
    %113 = tpu.memref_squeeze %112 : memref<1x10x128xf32, #tpu.memory_space<vmem>> -> memref<10x128xf32, #tpu.memory_space<vmem>>
    %114 = tpu.memref_slice %arg7[%c3_i32_119, %c1_i32_120] : memref<4x2x!tpu.dma_semaphore, #tpu.memory_space<semaphore_mem>> -> memref<1x1x!tpu.dma_semaphore, #tpu.memory_space<semaphore_mem>>
    %115 = tpu.memref_squeeze %114 : memref<1x1x!tpu.dma_semaphore, #tpu.memory_space<semaphore_mem>> -> memref<!tpu.dma_semaphore, #tpu.memory_space<semaphore_mem>>
    tpu.wait_dma2 semaphore(%115 : memref<!tpu.dma_semaphore, #tpu.memory_space<semaphore_mem>>) src(%111 : memref<10x128xf32, #tpu.memory_space<any>>) dst(%113 : memref<10x128xf32, #tpu.memory_space<vmem>>)
    return
  }
  func.func @transform_0(%arg0: i32, %arg1: memref<8xi32, #tpu.memory_space<smem>>) -> (i32, i32, i32) {
    %c0_i32 = arith.constant 0 : i32
    %c0_i32_0 = arith.constant 0 : i32
    %c0_i32_1 = arith.constant 0 : i32
    return %arg0, %c0_i32, %c0_i32_0 : i32, i32, i32
  }
  func.func @transform_1(%arg0: i32, %arg1: memref<8xi32, #tpu.memory_space<smem>>) -> (i32, i32) {
    %c0_i32 = arith.constant 0 : i32
    %c0_i32_0 = arith.constant 0 : i32
    %c0_i32_1 = arith.constant 0 : i32
    return %c0_i32, %c0_i32_0 : i32, i32
  }
  func.func @transform_4(%arg0: i32, %arg1: memref<8xi32, #tpu.memory_space<smem>>) -> (i32, i32, i32) {
    %c0_i32 = arith.constant 0 : i32
    %c0_i32_0 = arith.constant 0 : i32
    %c0_i32_1 = arith.constant 0 : i32
    return %arg0, %c0_i32, %c0_i32_0 : i32, i32, i32
  }
}

</mosaic_0001>

<bundles_post_ra>
// kernel: tpu_custom_call.1
= control target key start
LH: loop header
LB: loop body
LE: loop exit
PB: predicated region body
PF: predicated region fallthrough
CT: control target
= control target key end

     0   :  { %s863_s21 = smov [#allocation4]   ;;  %s1047_s0 = inlined_call_operand.vmem [shape: s32[8], index: 0, kind: input, shape index: {}]   ;;  %s1048_s1 = inlined_call_operand.vmem [shape: f32[8,1,128], index: 1, kind: input, shape index: {}]   ;;  %s1049_s2 = inlined_call_operand.vmem [shape: f32[5,128], index: 2, kind: input, shape index: {}]   ;;  %s1050_s3 = inlined_call_operand.vmem [shape: f32[6,1,128], index: 3, kind: input, shape index: {}]   ;;  %s1051_s4 = inlined_call_operand.vmem [shape: f32[6,10,128], index: 4, kind: input, shape index: {}]   ;;  %s1052_s5 = inlined_call_operand.hbm [shape: f32[8,16,128], index: 5, kind: output, shape index: {}]  }
   0x1   :  { %s11_s20 = sshll.u32 %s1047_s0, 4  ;;  %s12_s20 = int_to_ptr.vmem [resolvable:$true] %s11_s20 }
   0x2   :  { %14 = dma.vmem_to_smem %s12_s20, 16, %s863_s21, [#allocation3] }
   0x3   :  { %825 = dma.done.wait [#allocation3], 16 }
   0x4   :  { %826 = vsyncadd [#allocation3], 4294967280 }
   0x5   :  { %17 = sfence }
   0x6   :  { %18 = vsyncpa [#allocation6], 0 }
   0x7   :  { %20 = vsyncpa [#allocation6 + $0x1], 0  ;;  %s899_s22 = smov 0   ;;  %s901_s23 = smov 0  }
   0x8   :  { %s903_s24 = smov 0   ;;  %s905_s25 = smov 0  }
   0x9 LB: > { %s920_s0 = sadd.s32 4294967295, %s861_s25   ;;  %s681_s26 = sadd.s32 4294967294, %s861_s25   ;;  %s861_s25 = sphi %s905_s25, %s1058_s25   ;;  %s857_s24 = sphi %s903_s24, %s1057_s24   ;;  %s853_s23 = sphi %s901_s23, %s1056_s23   ;;  %s849_s22 = sphi %s899_s22, %s1055_s22  }
   0xa   : > { %s924_s27 = sadd.s32 1, %s861_s25   ;;  %s80_s28 = sadd.s32 1, %s857_s24 }
   0xb   : > { %s77_s29 = ssub.s32 %s861_s25, %s924_s27  ;;  %p90_p0 = scmp.ne.s32.totalorder %s857_s24, %s853_s23 }
   0xc   : > { %p78_p1 = scmp.eq.s32.totalorder %s77_s29, 0  ;;  %p91_p2 = scmp.eq.s32.totalorder %s920_s0, 1 }
   0xd   : > { %p96_p3 = scmp.ne.s32.totalorder %s853_s23, %s849_s22  ;;  %p97_p4 = scmp.eq.s32.totalorder %s681_s26, 1 }
   0xe   : > { %s935_s30 = scalar_select %p78_p1, %s857_s24, %s80_s28  }
   0xf   : > { %p937_p5 = por %p91_p2, %p90_p0  ;;  %p941_p6 = por %p97_p4, %p96_p3 }
  0x10   : > { %p684_p7 = scmp.ge.s32.totalorder %s861_s25, 1  ;;  %p126_p8 = scmp.lt.s32.totalorder %s861_s25, 3 }
  0x12   : > { %p127_p9 = pnand %p684_p7, %p126_p8 }
  0x13   : > { %s948_s8 = sshll.u32 (!%p127_p9), %s920_s0, 2  ;;  %s144_s9 = sand.u32 (!%p127_p9), 1, %s853_s23  }
  0x14   : > { %130 = sbr.rel (%p127_p9) target bundleno = 119 (0x77), region = 28  ;;  %p148_p10 = scmp.lt.s32.totalorder (!%p127_p9), %s948_s8, 7 }
  0x15   : > { %s154_s10 = sld [smem:[#allocation4 + %s948_s8]] (!%p127_p9)  ;;  %s685_s12 = sshll.u32 (!%p127_p9), %s144_s9, 6 }
  0x16   : > { %s964_s19 = scalar_lea.vmem (!%p127_p9), [#allocation5], %s685_s12 }
  0x19   : > { %s149_s11 = scalar_select %p148_p10, %s948_s8, 7 }
  0x1b   : > { %s959_s15 = scalar_lea.vmem %s1048_s1, %s149_s11  ;;  %s155_s18 = scalar_lea.vmem %s1050_s3, %s154_s10 }
  0x1c   : > { %v170_v0 = vld [vmem:[%s155_s18] sm:$0x1] }
  0x1d   : > { %171 = vst [vmem:[%s964_s19] sm:$0x1] %v170_v0 }
  0x1e   : > { %189 = vsyncadd [#allocation2], 16  ;;  %s688_s20 = sshll.u32 %s154_s10, 4 }
  0x1f   : > { %s191_s28 = scalar_lea.vmem %s1051_s4, %s688_s20 }
  0x20   : > { %v206_v1 = vld [vmem:[%s191_s28] sm:$0xff]  ;;  %v690_v2 = vld [vmem:[%s191_s28 + $0x8] sm:$0x3] }
  0x21   : > { %689 = vst [vmem:[%s964_s19 + $0x6] sm:$0xff] %v206_v1 }
  0x22   : > { %691 = vst [vmem:[%s964_s19 + $0xe] sm:$0x3] %v690_v2 }
  0x23   : > { %223 = vsyncadd [#allocation2 + $0x1], 160  ;;  %s224_s29 = sadd.s32 1, %s948_s8 }
  0x24   : > { %s225_s11 = sld [smem:[#allocation4 + %s224_s29]] }
  0x2a   : > { %s226_s14 = scalar_lea.vmem %s1050_s3, %s225_s11 }
  0x2b   : > { %v243_v3 = vld [vmem:[%s226_s14] sm:$0x1] }
  0x2c   : > { %692 = vst [vmem:[%s964_s19 + $0x10] sm:$0x1] %v243_v3 }
  0x2d   : > { %262 = vsyncadd [#allocation2 + $0x2], 16  ;;  %s693_s10 = sshll.u32 %s225_s11, 4 }
  0x2e   : > { %s264_s18 = scalar_lea.vmem %s1051_s4, %s693_s10 }
  0x2f   : > { %v279_v4 = vld [vmem:[%s264_s18] sm:$0xff]  ;;  %v695_v5 = vld [vmem:[%s264_s18 + $0x8] sm:$0x3] }
  0x30   : > { %694 = vst [vmem:[%s964_s19 + $0x16] sm:$0xff] %v279_v4 }
  0x31   : > { %696 = vst [vmem:[%s964_s19 + $0x1e] sm:$0x3] %v695_v5 }
  0x32   : > { %296 = vsyncadd [#allocation2 + $0x3], 160  ;;  %s297_s20 = sadd.s32 2, %s948_s8 }
  0x33   : > { %s298_s21 = sld [smem:[#allocation4 + %s297_s20]] }
  0x39   : > { %s299_s29 = scalar_lea.vmem %s1050_s3, %s298_s21 }
  0x3a   : > { %v316_v6 = vld [vmem:[%s299_s29] sm:$0x1] }
  0x3b   : > { %697 = vst [vmem:[%s964_s19 + $0x20] sm:$0x1] %v316_v6 }
  0x3c   : > { %335 = vsyncadd [#allocation2 + $0x4], 16  ;;  %s698_s11 = sshll.u32 %s298_s21, 4 }
  0x3d   : > { %s337_s14 = scalar_lea.vmem %s1051_s4, %s698_s11 }
  0x3e   : > { %v352_v7 = vld [vmem:[%s337_s14] sm:$0xff]  ;;  %v700_v8 = vld [vmem:[%s337_s14 + $0x8] sm:$0x3] }
  0x3f   : > { %699 = vst [vmem:[%s964_s19 + $0x26] sm:$0xff] %v352_v7 }
  0x40   : > { %701 = vst [vmem:[%s964_s19 + $0x2e] sm:$0x3] %v700_v8 }
  0x41   : > { %369 = vsyncadd [#allocation2 + $0x5], 160  ;;  %s370_s10 = sadd.s32 3, %s948_s8 }
  0x42   : > { %s371_s16 = sld [smem:[#allocation4 + %s370_s10]] }
  0x48   : > { %s372_s20 = scalar_lea.vmem %s1050_s3, %s371_s16 }
  0x49   : > { %v389_v9 = vld [vmem:[%s372_s20] sm:$0x1] }
  0x4a   : > { %702 = vst [vmem:[%s964_s19 + $0x30] sm:$0x1] %v389_v9 }
  0x4b   : > { %408 = vsyncadd [#allocation2 + $0x6], 16  ;;  %s703_s21 = sshll.u32 %s371_s16, 4 }
  0x4c   : > { %s410_s29 = scalar_lea.vmem %s1051_s4, %s703_s21 }
  0x4d   : > { %v425_v10 = vld [vmem:[%s410_s29] sm:$0xff]  ;;  %v705_v11 = vld [vmem:[%s410_s29 + $0x8] sm:$0x3] }
  0x4e   : > { %704 = vst [vmem:[%s964_s19 + $0x36] sm:$0xff] %v425_v10 }
  0x4f   : > { %706 = vst [vmem:[%s964_s19 + $0x3e] sm:$0x3] %v705_v11 }
  0x50   : > { %442 = vsyncadd [#allocation2 + $0x7], 160  ;;  %v443_v12 = vld [vmem:[%s1049_s2] sm:$0x1f] }
  0x51   : > { %v765_v13 = vld [vmem:[%s959_s15] ss:$0 sm:$0xff]  ;;  %v766_v14 = vld [vmem:[%s959_s15 + $0x1] ss:$0 sm:$0xff]  ;;  %v767_v15 = vld [vmem:[%s959_s15 + $0x2] ss:$0 sm:$0xff] }
  0x52   : > { %v460_v16 = vadd.f32 %v765_v13, %v443_v12  ;;  %v461_v17 = vadd.f32 %v766_v14, %v443_v12  ;;  %v768_v18 = vld [vmem:[%s959_s15 + $0x3] ss:$0 sm:$0xff]  ;;  %v462_v19 = vadd.f32 %v767_v15, %v443_v12 }
  0x53   : > { %v463_v20 = vadd.f32 %v768_v18, %v443_v12 }
  0x54   : > { %464 = vst [vmem:[%s964_s19 + $0x1] sm:$0x1f] %v460_v16 }
  0x55   : > { %465 = vst [vmem:[%s964_s19 + $0x11] sm:$0x1f] %v461_v17 }
  0x56   : > { %466 = vst [vmem:[%s964_s19 + $0x21] sm:$0x1f] %v462_v19 }
  0x57   : > { %467 = vst [vmem:[%s964_s19 + $0x31] sm:$0x1f] %v463_v20 }
  0x58   : > { %827 = dma.done.wait [#allocation2], 16 }
  0x59   : > { %828 = vsyncadd [#allocation2], 4294967280 }
  0x5a   : > { %829 = dma.done.wait [#allocation2 + $0x1], 160 }
  0x5b   : > { %830 = vsyncadd [#allocation2 + $0x1], 4294967136 }
  0x5c   : > { %831 = dma.done.wait [#allocation2 + $0x2], 16 }
  0x5d   : > { %832 = vsyncadd [#allocation2 + $0x2], 4294967280 }
  0x5e   : > { %833 = dma.done.wait [#allocation2 + $0x3], 160 }
  0x5f   : > { %834 = vsyncadd [#allocation2 + $0x3], 4294967136 }
  0x60   : > { %835 = dma.done.wait [#allocation2 + $0x4], 16 }
  0x61   : > { %836 = vsyncadd [#allocation2 + $0x4], 4294967280 }
  0x62   : > { %837 = dma.done.wait [#allocation2 + $0x5], 160 }
  0x63   : > { %838 = vsyncadd [#allocation2 + $0x5], 4294967136 }
  0x64   : > { %839 = dma.done.wait [#allocation2 + $0x6], 16 }
  0x65   : > { %840 = vsyncadd [#allocation2 + $0x6], 4294967280 }
  0x66   : > { %841 = dma.done.wait [#allocation2 + $0x7], 160 }
  0x67   : > { %842 = vsyncadd [#allocation2 + $0x7], 4294967136  ;;  %s722_s15 = sshll.u32 %s920_s0, 6  ;;  %s500_s10 = sshll.u32 %s964_s19, 4  ;;  %s501_s10 = int_to_ptr.vmem [resolvable:$true] %s500_s10 }
  0x68   : > { %s499_s14 = scalar_lea.hbm %s1052_s5, %s722_s15  ;;  %s487_s17 = scalar_lea.sflag [#allocation6], %s144_s9 }
  0x69   : > { %s502_s16 = sshll.u32 %s499_s14, 4  ;;  %s801_s0 = scalar_lea.hbm %s1052_s5, 128  ;;  %s503_s16 = int_to_ptr.hbm [resolvable:$true] %s502_s16 }
  0x6a   : > { %s795_s18 = sshra.s32 %s503_s16, 4  ;;  %s796_s18 = int_to_ptr.hbm [resolvable:$true] %s795_s18 }
  0x6b   : > { %s797_s20 = scalar_lea.hbm %s796_s18, 64  ;;  %p802_p0 = scmp.lt.s32.totalorder %s796_s18, %s1052_s5 }
  0x6c   : > { %p798_p11 = scmp.ne.s32.totalorder %s796_s18, %s797_s20  ;;  %p803_p1 = scmp.lt.s32.totalorder %s801_s0, %s797_s20 }
  0x6e   : > { %p799_p12 = pnand %p798_p11, %p937_p5  ;;  %p804_p2 = por %p803_p1, %p802_p0 }
  0x70   : > { %p800_p13 = pneg %p799_p12 }
  0x72   : > { %p805_p3 = pnand %p804_p2, %p800_p13 }
  0x74   : > { %808 = shalt.err (!%p805_p3)
}
  0x75   : > { %s864_s9 = smov 128   ;;  %s865_s19 = smov 8  }
  0x76   : > { %723 = dma.vmem_to_hbm [thread:$0]  (%p937_p5), %s501_s10, 1024, %s503_s16, %s487_s17, %s864_s9, %s864_s9, %s865_s19  }
  0x77 PF: > { %p729_p4 = scmp.ge.s32.totalorder %s861_s25, 2  ;;  %s517_s8 = sand.u32 1, %s849_s22  }
  0x78   : > { %s518_s11 = scalar_lea.sflag [#allocation6], %s517_s8 }
  0x79   : > { %p726_p7 = pnand %p729_p4, %p941_p6 }
  0x7b   : > { %p727_p8 = pneg %p726_p7 }
  0x7d   : > { %844 = dma.done.wait (%p727_p8), %s518_s11, 1024  }
  0x7e   : > { %846 = vsyncadd (%p727_p8), %s518_s11, 4294966272  ;;  %p23_p9 = scmp.ge.s32.totalorder %s924_s27, 4   ;;  %s1055_s22 = smov %s853_s23 }
  0x7f   : > { %s1056_s23 = smov %s857_s24  ;;  %s1057_s24 = smov %s935_s30 }
  0x80   : > { %s1058_s25 = smov %s924_s27  ;;  %25 = sbr.rel (!%p23_p9) target bundleno = 9 (0x9), region = 356 }
  0x85   :  { %524 = vsyncpa [#allocation6], 1 }
  0x86   :  { %526 = vsyncpa [#allocation6 + $0x1], 1 }
  0x87   :  { %527 = vsyncmov [#allocation2] }
  0x8a   :  { %s528_s25 = vpop.sfrf %527 }
  0x8b   :  { %p713_p5 = scmp.ne.s32.totalorder %s528_s25, 0 }
  0x8d   :  { %532 = shalt.err (%p713_p5)  }
  0x8e   :  { %534 = vsyncmov [#allocation2 + $0x1] }
  0x91   :  { %s535_s6 = vpop.sfrf %534 }
  0x92   :  { %p714_p6 = scmp.ne.s32.totalorder %s535_s6, 0 }
  0x94   :  { %539 = shalt.err (%p714_p6)  }
  0x95   :  { %541 = vsyncmov [#allocation2 + $0x2] }
  0x98   :  { %s542_s7 = vpop.sfrf %541 }
  0x99   :  { %p715_p10 = scmp.ne.s32.totalorder %s542_s7, 0 }
  0x9b   :  { %546 = shalt.err (%p715_p10)  }
  0x9c   :  { %548 = vsyncmov [#allocation2 + $0x3] }
  0x9f   :  { %s549_s15 = vpop.sfrf %548 }
  0xa0   :  { %p716_p11 = scmp.ne.s32.totalorder %s549_s15, 0 }
  0xa2   :  { %553 = shalt.err (%p716_p11)  }
  0xa3   :  { %555 = vsyncmov [#allocation2 + $0x4] }
  0xa6   :  { %s556_s27 = vpop.sfrf %555 }
  0xa7   :  { %p717_p12 = scmp.ne.s32.totalorder %s556_s27, 0 }
  0xa9   :  { %560 = shalt.err (%p717_p12)  }
  0xaa   :  { %562 = vsyncmov [#allocation2 + $0x5] }
  0xad   :  { %s563_s1 = vpop.sfrf %562 }
  0xae   :  { %p718_p13 = scmp.ne.s32.totalorder %s563_s1, 0 }
  0xb0   :  { %567 = shalt.err (%p718_p13)  }
  0xb1   :  { %569 = vsyncmov [#allocation2 + $0x6] }
  0xb4   :  { %s570_s2 = vpop.sfrf %569 }
  0xb5   :  { %p719_p0 = scmp.ne.s32.totalorder %s570_s2, 0 }
  0xb7   :  { %574 = shalt.err (%p719_p0)  }
  0xb8   :  { %576 = vsyncmov [#allocation2 + $0x7] }
  0xbb   :  { %s577_s3 = vpop.sfrf %576 }
  0xbc   :  { %p720_p1 = scmp.ne.s32.totalorder %s577_s3, 0 }
  0xbe   :  { %581 = shalt.err (%p720_p1)  }

</bundles_post_ra>
